<compile_context>
chip_gen: v7x
topology: tpu7x:2x2x1
jax: 0.10.0
libtpu: 0.0.40
codegen_flags: <defaults>
</compile_context>

<pallas_src>
import numpy as np

import jax
import jax.numpy as jnp
from jax.experimental import pallas as pl
from jax.experimental.pallas import tpu as pltpu

# TODO(synk): bf16 stands in for half_dtype_instance.half_dtype (fp16 on GPU);
# bf16 has fewer mantissa bits so coefficients differ slightly from an fp16 port.
HALF_DTYPE = jnp.bfloat16
LANES = 128


def _linear_beta_schedule(num_steps, beta_start=0.0001, beta_end=0.02):
    """get_named_beta_schedule('linear', ...) -- computed in float64 numpy."""
    return np.linspace(beta_start, beta_end, num_steps, dtype=np.float64)


def _pick_row_tile(total_rows, max_rows=2048, min_rows=256):
    """Row tile for the flattened (total_rows, 128) layout.

    - full extent for small problems (legal for any size, single step),
    - otherwise an 8-aligned tile that (a) yields >= 2 grid steps so v7x's two
      TensorCores both get work and (b) stays <= max_rows (1 MiB of f32 per
      input block -> ~6 MiB double-buffered footprint, under v5e's 16 MiB
      scoped-VMEM default without any compiler params).
    """
    if total_rows <= min_rows:
        return total_rows
    half = -(-total_rows // 2)          # ceil(total_rows / 2)
    tile = -(-half // 8) * 8            # 8-aligned
    return max(min_rows, min(max_rows, tile))


def _noisy_kernel(sa_ref, som_ref, latent_ref, noise_ref, noisy_ref):
    """noisy = sa * latent + som * noise.

    sa_ref / som_ref : (block_rows, 1) f32 per-row coefficients (broadcast on lanes)
    latent_ref / noise_ref : (block_rows, lane_tile) inputs in native dtype
    noisy_ref : (block_rows, lane_tile) HALF_DTYPE output
    f32 math over the whole block, single cast at the store.
    """
    noisy = (sa_ref[...] * latent_ref[...].astype(jnp.float32)
             + som_ref[...] * noise_ref[...].astype(jnp.float32))
    noisy_ref[...] = noisy.astype(noisy_ref.dtype)


def _noisy_and_cast_kernel(sa_ref, som_ref, latent_ref, noise_ref,
                           noisy_ref, noise_half_ref):
    """Same as _noisy_kernel plus a fused half-cast of `noise` (noise is already
    resident in VMEM, so this only costs its HBM write). Used only when the
    incoming noise is not already HALF_DTYPE."""
    nz = noise_ref[...]
    noisy = (sa_ref[...] * latent_ref[...].astype(jnp.float32)
             + som_ref[...] * nz.astype(jnp.float32))
    noisy_ref[...] = noisy.astype(noisy_ref.dtype)
    noise_half_ref[...] = nz.astype(noise_half_ref.dtype)


class GaussianDiffusion:
    """JAX/Pallas port of the PyTorch GaussianDiffusion module (forward only)."""

    def __init__(self, num_diffusion_steps, schedule_name="linear", seed=None,
                 beta_start=0.0001, beta_end=0.02):
        if num_diffusion_steps <= 0:
            raise ValueError("Number of diffusion steps must be positive.")
        if schedule_name != "linear":
            # TODO(synk): only the 'linear' named beta schedule is implemented here.
            raise NotImplementedError(schedule_name)
        # TODO(synk): torch.manual_seed(seed) has no stateless-JAX equivalent;
        # the module itself draws no randomness in forward, so it is unused.
        self.num_diffusion_steps = num_diffusion_steps
        self.schedule_name = schedule_name

        betas = _linear_beta_schedule(num_diffusion_steps, beta_start, beta_end)
        assert betas.ndim == 1, "betas must be 1-D"
        assert np.all((betas > 0) & (betas <= 1.0))
        alphas = 1.0 - betas
        alphas_cum_prod = np.cumprod(alphas, axis=0)
        self.sqrt_alphas_cum_prod = jnp.asarray(
            np.sqrt(alphas_cum_prod), dtype=jnp.float32)
        self.sqrt_one_minus_alphas_cum_prod = jnp.asarray(
            np.sqrt(1.0 - alphas_cum_prod), dtype=jnp.float32)

    def __call__(self, latent, noise, timestep):
        if latent.ndim != 4:
            raise ValueError(f"Samples ndim should be 4. Got {latent.ndim}")
        B, C, H, W = latent.shape
        feat = C * H * W
        ts = timestep.astype(jnp.int32)

        # Per-sample coefficients: mimic extract()'s half round-trip, keep the
        # FMA itself in f32 (PyTorch half * f32 -> f32 promotion).
        sa_b = jnp.take(self.sqrt_alphas_cum_prod, ts, axis=0
                        ).astype(HALF_DTYPE).astype(jnp.float32)
        som_b = jnp.take(self.sqrt_one_minus_alphas_cum_prod, ts, axis=0
                         ).astype(HALF_DTYPE).astype(jnp.float32)

        # Only fuse a noise->half cast when the input isn't already half;
        # otherwise the ground-truth-noise return is the input itself (no
        # redundant HBM write stream).
        fuse_noise_cast = noise.dtype != HALF_DTYPE
        kernel = _noisy_and_cast_kernel if fuse_noise_cast else _noisy_kernel

        latent2d = latent.reshape(B, feat)
        noise2d = noise.reshape(B, feat)

        if feat % LANES == 0:
            # Fast path: lane-dense (B*rows, 128) slab; one grid step covers
            # many samples. Coefficients repeated per-row (tiny array).
            rows = feat // LANES
            total_rows = B * rows
            lat_in = latent2d.reshape(total_rows, LANES)
            nz_in = noise2d.reshape(total_rows, LANES)
            sa_in = jnp.repeat(sa_b, rows)[:, None]      # (total_rows, 1)
            som_in = jnp.repeat(som_b, rows)[:, None]

            row_tile = _pick_row_tile(total_rows)
            grid = (pl.cdiv(total_rows, row_tile),)
            coef_spec = pl.BlockSpec((row_tile, 1), lambda i: (i, 0))
            data_spec = pl.BlockSpec((row_tile, LANES), lambda i: (i, 0))
            out2d_shape = (total_rows, LANES)
            semantics = ("parallel",)
        else:
            # Ragged feature count: tile the natural (B, feat) layout directly
            # (masked edge blocks) instead of materialising padded HBM copies.
            lat_in, nz_in = latent2d, noise2d
            sa_in = sa_b[:, None]                        # (B, 1)
            som_in = som_b[:, None]

            b_tile = B if B <= 8 else 8
            max_lane = 32768                             # 1 MiB f32 at b_tile=8
            lane_tile = feat if feat <= max_lane else max_lane
            grid = (pl.cdiv(B, b_tile), pl.cdiv(feat, lane_tile))
            coef_spec = pl.BlockSpec((b_tile, 1), lambda i, j: (i, 0))
            data_spec = pl.BlockSpec((b_tile, lane_tile), lambda i, j: (i, j))
            out2d_shape = (B, feat)
            semantics = ("parallel", "parallel")

        out_shapes = [jax.ShapeDtypeStruct(out2d_shape, HALF_DTYPE)]
        out_specs = [data_spec]
        if fuse_noise_cast:
            out_shapes.append(jax.ShapeDtypeStruct(out2d_shape, HALF_DTYPE))
            out_specs.append(data_spec)

        results = pl.pallas_call(
            kernel,
            out_shape=tuple(out_shapes),
            grid_spec=pltpu.PrefetchScalarGridSpec(
                num_scalar_prefetch=0,
                grid=grid,
                in_specs=[coef_spec, coef_spec, data_spec, data_spec],
                out_specs=out_specs,
            ),
            compiler_params=pltpu.CompilerParams(
                dimension_semantics=semantics,
            ),
        )(sa_in, som_in, lat_in, nz_in)

        noisy = results[0].reshape(B, C, H, W)
        if fuse_noise_cast:
            noise_half = results[1].reshape(B, C, H, W)
        else:
            noise_half = noise   # already HALF_DTYPE: zero extra traffic
        return noisy, noise_half, ts


def _reference(module, latent, noise, timestep):
    sa = module.sqrt_alphas_cum_prod[timestep].astype(HALF_DTYPE).astype(jnp.float32)
    som = module.sqrt_one_minus_alphas_cum_prod[timestep].astype(HALF_DTYPE).astype(
        jnp.float32)
    sa = sa.reshape(-1, 1, 1, 1)
    som = som.reshape(-1, 1, 1, 1)
    lat = latent.astype(jnp.float32)
    nz = noise.astype(jnp.float32)
    return (sa * lat + som * nz).astype(HALF_DTYPE)


if __name__ == "__main__":
    T = 8  # num_diffusion_steps
    module = GaussianDiffusion(num_diffusion_steps=T, schedule_name="linear")

    key = jax.random.PRNGKey(0)
    k1, k2, k3 = jax.random.split(key, 3)

    # --- main check: lane-aligned shapes, f32 noise (fused-cast path) -------
    B, C, H, W = 2, 4, 16, 16
    latent = jax.random.normal(k1, (B, C, H, W), dtype=jnp.float32)
    noise = jax.random.normal(k2, (B, C, H, W), dtype=jnp.float32)
    timestep = jax.random.randint(k3, (B,), 0, T, dtype=jnp.int32)

    noisy, gt_noise, ts_out = module(latent, noise, timestep)
    noisy = jax.block_until_ready(noisy)
    gt_noise = jax.block_until_ready(gt_noise)

    ref = _reference(module, latent, noise, timestep)
    assert noisy.shape == (B, C, H, W) and noisy.dtype == HALF_DTYPE
    assert gt_noise.shape == (B, C, H, W) and gt_noise.dtype == HALF_DTYPE
    assert jnp.allclose(
        noisy.astype(jnp.float32), ref.astype(jnp.float32), atol=1e-2, rtol=1e-2)
    assert jnp.allclose(
        gt_noise.astype(jnp.float32),
        noise.astype(HALF_DTYPE).astype(jnp.float32), atol=1e-2, rtol=1e-2)

    # --- bf16-noise path: no second kernel output --------------------------
    noise_h = noise.astype(HALF_DTYPE)
    noisy_h, gt_h, _ = module(latent, noise_h, timestep)
    noisy_h = jax.block_until_ready(noisy_h)
    ref_h = _reference(module, latent, noise_h, timestep)
    assert gt_h.dtype == HALF_DTYPE
    assert jnp.allclose(
        noisy_h.astype(jnp.float32), ref_h.astype(jnp.float32), atol=1e-2, rtol=1e-2)
    assert jnp.array_equal(gt_h, noise_h)

    # --- ragged feature count (feat % 128 != 0) path -----------------------
    Br, Cr, Hr, Wr = 2, 3, 5, 5
    kr1, kr2, kr3 = jax.random.split(jax.random.PRNGKey(0), 3)
    latent_r = jax.random.normal(kr1, (Br, Cr, Hr, Wr), dtype=jnp.float32)
    noise_r = jax.random.normal(kr2, (Br, Cr, Hr, Wr), dtype=jnp.float32)
    ts_r = jax.random.randint(kr3, (Br,), 0, T, dtype=jnp.int32)
    noisy_r, gt_r, _ = module(latent_r, noise_r, ts_r)
    noisy_r = jax.block_until_ready(noisy_r)
    ref_r = _reference(module, latent_r, noise_r, ts_r)
    assert noisy_r.shape == (Br, Cr, Hr, Wr) and noisy_r.dtype == HALF_DTYPE
    assert jnp.allclose(
        noisy_r.astype(jnp.float32), ref_r.astype(jnp.float32), atol=1e-2, rtol=1e-2)
    assert jnp.allclose(
        gt_r.astype(jnp.float32),
        noise_r.astype(HALF_DTYPE).astype(jnp.float32), atol=1e-2, rtol=1e-2)

    print("KERNEL_OK")
</pallas_src>

<mosaic_0001>
module attributes {stable_mosaic.version = 11 : i64} {
  func.func @_noisy_and_cast_kernel(%arg0: i32, %arg1: memref<16x1xf32, #tpu.memory_space<vmem>>, %arg2: memref<16x1xf32, #tpu.memory_space<vmem>>, %arg3: memref<16x128xf32, #tpu.memory_space<vmem>>, %arg4: memref<16x128xf32, #tpu.memory_space<vmem>>, %arg5: memref<16x128xbf16, #tpu.memory_space<vmem>>, %arg6: memref<16x128xbf16, #tpu.memory_space<vmem>>) attributes {dimension_semantics = [#tpu.dimension_semantics<parallel>], iteration_bounds = array<i64: 1>, scalar_prefetch = 0 : i64, scratch_operands = 0 : i64, tpu.core_type = #tpu.core_type<tc>, window_params = [{transform_indices = @transform_0, window_bounds = array<i64: 16, 1>}, {transform_indices = @transform_1, window_bounds = array<i64: 16, 1>}, {transform_indices = @transform_2, window_bounds = array<i64: 16, 128>}, {transform_indices = @transform_3, window_bounds = array<i64: 16, 128>}, {transform_indices = @transform_4, window_bounds = array<i64: 16, 128>}, {transform_indices = @transform_5, window_bounds = array<i64: 16, 128>}]} {
    %c0 = arith.constant 0 : index
    %c0_0 = arith.constant 0 : index
    %0 = vector.load %arg4[%c0, %c0_0] : memref<16x128xf32, #tpu.memory_space<vmem>>, vector<16x128xf32>
    %c0_1 = arith.constant 0 : index
    %c0_2 = arith.constant 0 : index
    %1 = vector.load %arg1[%c0_1, %c0_2] : memref<16x1xf32, #tpu.memory_space<vmem>>, vector<16x1xf32>
    %c0_3 = arith.constant 0 : index
    %c0_4 = arith.constant 0 : index
    %2 = vector.load %arg3[%c0_3, %c0_4] : memref<16x128xf32, #tpu.memory_space<vmem>>, vector<16x128xf32>
    %3 = vector.broadcast %1 : vector<16x1xf32> to vector<16x128xf32>
    %4 = arith.mulf %3, %2 : vector<16x128xf32>
    %c0_5 = arith.constant 0 : index
    %c0_6 = arith.constant 0 : index
    %5 = vector.load %arg2[%c0_5, %c0_6] : memref<16x1xf32, #tpu.memory_space<vmem>>, vector<16x1xf32>
    %6 = vector.broadcast %5 : vector<16x1xf32> to vector<16x128xf32>
    %7 = arith.mulf %6, %0 : vector<16x128xf32>
    %8 = arith.addf %4, %7 : vector<16x128xf32>
    %9 = arith.truncf %8 : vector<16x128xf32> to vector<16x128xbf16>
    %c0_7 = arith.constant 0 : index
    %c0_8 = arith.constant 0 : index
    %10 = vector.load %arg5[%c0_7, %c0_8] : memref<16x128xbf16, #tpu.memory_space<vmem>>, vector<16x128xbf16>
    tpu.vector_store %arg5[%c0_7, %c0_8], %9 {strides = array<i32>} : memref<16x128xbf16, #tpu.memory_space<vmem>>, vector<16x128xbf16>,
    %11 = arith.truncf %0 : vector<16x128xf32> to vector<16x128xbf16>
    %c0_9 = arith.constant 0 : index
    %c0_10 = arith.constant 0 : index
    %12 = vector.load %arg6[%c0_9, %c0_10] : memref<16x128xbf16, #tpu.memory_space<vmem>>, vector<16x128xbf16>
    tpu.vector_store %arg6[%c0_9, %c0_10], %11 {strides = array<i32>} : memref<16x128xbf16, #tpu.memory_space<vmem>>, vector<16x128xbf16>,
    return
  }
  func.func @transform_0(%arg0: i32) -> (i32, i32) {
    %c0_i32 = arith.constant 0 : i32
    %c0_i32_0 = arith.constant 0 : i32
    return %arg0, %c0_i32 : i32, i32
  }
  func.func @transform_1(%arg0: i32) -> (i32, i32) {
    %c0_i32 = arith.constant 0 : i32
    %c0_i32_0 = arith.constant 0 : i32
    return %arg0, %c0_i32 : i32, i32
  }
  func.func @transform_2(%arg0: i32) -> (i32, i32) {
    %c0_i32 = arith.constant 0 : i32
    %c0_i32_0 = arith.constant 0 : i32
    return %arg0, %c0_i32 : i32, i32
  }
  func.func @transform_3(%arg0: i32) -> (i32, i32) {
    %c0_i32 = arith.constant 0 : i32
    %c0_i32_0 = arith.constant 0 : i32
    return %arg0, %c0_i32 : i32, i32
  }
  func.func @transform_4(%arg0: i32) -> (i32, i32) {
    %c0_i32 = arith.constant 0 : i32
    %c0_i32_0 = arith.constant 0 : i32
    return %arg0, %c0_i32 : i32, i32
  }
  func.func @transform_5(%arg0: i32) -> (i32, i32) {
    %c0_i32 = arith.constant 0 : i32
    %c0_i32_0 = arith.constant 0 : i32
    return %arg0, %c0_i32 : i32, i32
  }
}

</mosaic_0001>

<bundles_post_ra>
// kernel: tpu_custom_call.1
= control target key start
LH: loop header
LB: loop body
LE: loop exit
PB: predicated region body
PF: predicated region fallthrough
CT: control target
= control target key end

     0   :  { %11 = vsyncpa [#allocation3], 0  ;;  %v180_v2 = vmov 0   ;;  %s269_s0 = inlined_call_operand.vmem [shape: f32[16,1], index: 0, kind: input, shape index: {}]   ;;  %s270_s1 = inlined_call_operand.vmem [shape: f32[16,1], index: 1, kind: input, shape index: {}]   ;;  %s271_s2 = inlined_call_operand.vmem [shape: f32[16,128], index: 2, kind: input, shape index: {}]   ;;  %s272_s3 = inlined_call_operand.vmem [shape: f32[16,128], index: 3, kind: input, shape index: {}]   ;;  %s273_s4 = inlined_call_operand.hbm [shape: bf16[16,128], index: 4, kind: output, shape index: {0}]   ;;  %s274_s5 = inlined_call_operand.hbm [shape: bf16[16,128], index: 5, kind: output, shape index: {1}]  }
   0x1   :  { %v39_v0 = vld [vmem:[%s270_s1] sm:$0xff]  ;;  %131 = vset.pattern.permute.xlu1 %v180_v2  ;;  %130 = vset.pattern.permute.xlu0 %v180_v2 }
   0x2   :  { %v23_v1 = vld [vmem:[%s269_s0] sm:$0xff]  ;;  %43 = vperm.xlu1 %131, %v39_v0  }
   0x3   :  { %29 = vperm.xlu0 %130, %v23_v1  }
   0x4   :  { %12 = vsyncpa [#allocation5], 0  ;;  %v40_v3 = vld [vmem:[%s270_s1 + $0x8] sm:$0xff]  ;;  %v21_v5 = vld [vmem:[%s272_s3] sm:$0xff]  ;;  %s181_s30 = smov [#allocation4]  }
   0x5   :  { %v24_v4 = vld [vmem:[%s269_s0 + $0x8] sm:$0xff]  ;;  %s92_s6 = sshll.u32 %s181_s30, 4  ;;  %s93_s6 = int_to_ptr.vmem [resolvable:$true] %s92_s6 }
   0x6   :  { %v22_v6 = vld [vmem:[%s272_s3 + $0x8] sm:$0xff]  ;;  %48 = vperm.xlu1 %131, %v40_v3   ;;  %s132_s1 = scalar_lea.vmem %s93_s6, 128  ;;  %p137_p1 = scmp.lt.s32.totalorder %s93_s6, %s93_s6 }
   0x7   :  { %34 = vperm.xlu0 %130, %v24_v4   ;;  %v123_v7 = vpack.c.bf16 %v22_v6, %v21_v5  ;;  %p133_p0 = scmp.ne.s32.totalorder %s93_s6, %s132_s1  ;;  %p138_p2 = scmp.lt.s32.totalorder %s132_s1, %s132_s1 }
   0x9   :  { %124 = vst [vmem:[#allocation4] sm:$0xff] %v123_v7   ;;  %p139_p3 = por %p138_p2, %p137_p1 }
   0xb   :  { %p140_p4 = pnand %p139_p3, %p133_p0 }
   0xd   :  { %143 = shalt.err (!%p140_p4)
}
   0xe   :  { %s144_s8 = scalar_lea.hbm %s274_s5, 128 }
   0xf   :  { %p145_p5 = scmp.ne.s32.totalorder %s274_s5, %s144_s8  ;;  %p148_p6 = scmp.lt.u32.totalorder %s144_s8, %s274_s5 }
  0x11   :  { %p150_p7 = pnand %p148_p6, %p145_p5 }
  0x13   :  { %153 = shalt.err (!%p150_p7)
}
  0x14   :  { %s182_s12 = smov 64   ;;  %s183_s13 = smov 4   ;;  %v25_v9 = vld [vmem:[%s271_s2] sm:$0xff]  ;;  %v26_v11 = vld [vmem:[%s271_s2 + $0x8] sm:$0xff] }
  0x15   :  { %98 = dma.vmem_to_hbm [thread:$0]  %s93_s6, 128, %s274_s5, [#allocation5], %s182_s12, %s182_s12, %s183_s13  }
  0x16   :  { %s184_s20 = smov [#allocation2]  }
  0x17   :  { %s80_s21 = sshll.u32 %s184_s20, 4  ;;  %s81_s21 = int_to_ptr.vmem [resolvable:$true] %s80_s21 }
  0x18   :  { %s154_s5 = scalar_lea.vmem %s81_s21, 128  ;;  %p159_p9 = scmp.lt.s32.totalorder %s81_s21, %s81_s21 }
  0x19   :  { %p155_p8 = scmp.ne.s32.totalorder %s81_s21, %s154_s5  ;;  %p160_p10 = scmp.lt.s32.totalorder %s154_s5, %s154_s5 }
  0x1b   :  { %p161_p11 = por %p160_p10, %p159_p9 }
  0x1d   :  { %p162_p12 = pnand %p161_p11, %p155_p8 }
  0x81   :  { %v44_v8 = vpop.permute.xlu1 %43 }
  0x82   :  { %v30_v10 = vpop.permute.xlu0 %29  ;;  %v51_v12 = vmul.f32 %v44_v8, %v21_v5 }
  0x83   :  { %v37_v13 = vmul.f32 %v30_v10, %v25_v9 }
  0x85   :  { %v49_v14 = vpop.permute.xlu1 %48  ;;  %v53_v18 = vadd.f32 %v51_v12, %v37_v13 }
  0x86   :  { %v35_v15 = vpop.permute.xlu0 %34  ;;  %v52_v16 = vmul.f32 %v49_v14, %v22_v6 }
  0x87   :  { %v38_v17 = vmul.f32 %v35_v15, %v26_v11 }
  0x89   :  { %v54_v19 = vadd.f32 %v52_v16, %v38_v17 }
  0x8b   :  { %v118_v20 = vpack.c.bf16 %v54_v19, %v53_v18 }
  0x8d   :  { %119 = vst [vmem:[#allocation2] sm:$0xff] %v118_v20  }
  0x8e   :  { %165 = shalt.err (!%p162_p12)
}
  0x8f   :  { %s166_s23 = scalar_lea.hbm %s273_s4, 128 }
  0x90   :  { %p167_p13 = scmp.ne.s32.totalorder %s273_s4, %s166_s23  ;;  %p170_p0 = scmp.lt.u32.totalorder %s166_s23, %s273_s4 }
  0x92   :  { %p172_p1 = pnand %p170_p0, %p167_p13 }
  0x94   :  { %175 = shalt.err (!%p172_p1)
}
  0x95   :  { %86 = dma.vmem_to_hbm [thread:$0]  %s81_s21, 128, %s273_s4, [#allocation3], %s182_s12, %s182_s12, %s183_s13  }
  0x96   :  { %176 = dma.done.wait [#allocation3], 128  }
  0x97   :  { %177 = vsyncadd [#allocation3], 4294967168 }
  0x98   :  { %178 = dma.done.wait [#allocation5], 128  }
  0x99   :  { %179 = vsyncadd [#allocation5], 4294967168 }
  0x9a   :  { %105 = vsyncpa [#allocation3], 1 }
  0x9b   :  { %106 = vsyncpa [#allocation5], 1 }

</bundles_post_ra>
